<compile_context>
chip_gen: v5e
topology: v5e:2x2
jax: 0.10.0
libtpu: 0.0.40
codegen_flags: <defaults>
</compile_context>

<pallas_src>
import functools
import math

import jax
import jax.numpy as jnp
from jax import lax
from jax.experimental import pallas as pl
from jax.experimental.pallas import tpu as pltpu


def mha_kernel(x_ref, bias_ref,
               wq_ref, bq_ref, wkv_ref, bkv_ref, wo_ref, bo_ref,
               out_ref,
               k_scr, v_scr, q_scr, cat_scr,
               *, num_heads, head_dim, q_tile, kv_chunk):
    """One grid step == (batch element b, query tile qi).

    x_ref   : (1, S,  E)   bf16  full sequence of batch b (Q source + K/V source)
    bias_ref: (1, 1,  S)   f32   additive mask bias (0 or -1e9) on the key axis
    wq_ref  : (E, H*Dh)    bf16  fused Q weights, pre-scaled by 1/sqrt(Dh)
    bq_ref  : (1, H*Dh)    f32   pre-scaled Q bias
    wkv_ref : (E, 2*H*Dh)  bf16  fused [Wk | Wv]
    bkv_ref : (1, 2*H*Dh)  f32
    wo_ref  : (H*Dh, E)    bf16  output projection in concat layout
    bo_ref  : (1, E)       f32
    k_scr/v_scr : (H, S, Dh) bf16 VMEM  cached K / V for the current batch elem
    q_scr   : (Tq, H*Dh)   bf16 VMEM    cached Q projection of this query tile
    cat_scr : (Tq, H*Dh)   bf16 VMEM    concatenated per-head attention outputs
    """
    H, Dh = num_heads, head_dim
    HD = H * Dh
    S = x_ref.shape[1]
    qi = pl.program_id(1)

    # ---- K/V projection: once per batch element, cached across query tiles.
    # Chunked over S so the f32 intermediate is bounded (a few hundred KiB)
    # instead of S*2*HD*4 bytes of hidden spill for realistic shapes.
    def kv_fill(start):
        xc = x_ref[0, pl.ds(start, kv_chunk), :]                    # (C, E) bf16
        kv = (jnp.dot(xc, wkv_ref[...],
                      preferred_element_type=jnp.float32)
              + bkv_ref[...])                                       # (C, 2*HD) f32
        for h in range(H):
            k_scr[h, pl.ds(start, kv_chunk), :] = (
                kv[:, h * Dh:(h + 1) * Dh].astype(jnp.bfloat16))
            v_scr[h, pl.ds(start, kv_chunk), :] = (
                kv[:, HD + h * Dh:HD + (h + 1) * Dh].astype(jnp.bfloat16))

    @pl.when(qi == 0)
    def _():
        n_chunks = S // kv_chunk
        if n_chunks == 1:                       # static (trace-time) branch
            kv_fill(0)
        else:
            @pl.loop(0, n_chunks)
            def _(c):
                kv_fill(pl.multiple_of(c * kv_chunk, kv_chunk))

    # ---- Q projection for this query tile: one lane-dense matmul. Cache the
    # bf16 result in VMEM so per-head slices are cheap ref reads (no live
    # (Tq, HD) f32 value held across the unrolled head loop).
    q_start = pl.multiple_of(qi * q_tile, q_tile)
    xq = x_ref[0, pl.ds(q_start, q_tile), :]                        # (Tq, E) bf16
    q_scr[...] = (jnp.dot(xq, wq_ref[...],
                          preferred_element_type=jnp.float32)
                  + bq_ref[...]).astype(jnp.bfloat16)

    bias = bias_ref[0]                                              # (1, S) f32

    # Static head loop (H is small; unrolled at trace time).
    # TODO(synk): for H >= ~8 switch to lax.fori_loop over heads to bound live
    # ranges instead of the Python unroll.
    for h in range(H):
        q_h = q_scr[:, h * Dh:(h + 1) * Dh]                         # (Tq, Dh) bf16
        k_h = k_scr[h]                                              # (S, Dh)  bf16
        v_h = v_scr[h]                                              # (S, Dh)  bf16

        # scores = q @ k^T (contract last dims; canonical NT MXU feed; the
        # 1/sqrt(Dh) scale is already folded into wq/bq).
        # TODO(synk): if profiling shows per-call XLU relayout of K, store K
        # pre-transposed as (H, Dh, S) at fill time instead.
        s = lax.dot_general(q_h, k_h,
                            dimension_numbers=(((1,), (1,)), ((), ())),
                            preferred_element_type=jnp.float32)     # (Tq, S)
        s = s + bias                                                # masked_fill as add

        # Numerically-stable softmax with DEFERRED normalization: the per-row
        # reciprocal scales the (Tq, Dh) output, not the (Tq, S) probabilities
        # (saves one full-width VPU pass per head). Kept in f32 (v5e-safe).
        m = jnp.max(s, axis=-1, keepdims=True)
        p = jnp.exp(s - m)                                          # (Tq, S) f32
        l = jnp.sum(p, axis=-1, keepdims=True)                      # (Tq, 1) f32

        out_h = jnp.dot(p.astype(jnp.bfloat16), v_h,
                        preferred_element_type=jnp.float32)         # (Tq, Dh) f32
        out_h = out_h * pl.reciprocal(l, approx=True)               # EUP slot
        cat_scr[:, h * Dh:(h + 1) * Dh] = out_h.astype(jnp.bfloat16)

    # ---- Single lane-dense output projection over the full concatenation:
    # one (Tq,HD)@(HD,E) matmul instead of H Dh-contraction matmuls plus H
    # read-modify-write passes over an f32 accumulator.
    out = (jnp.dot(cat_scr[...], wo_ref[...],
                   preferred_element_type=jnp.float32)
           + bo_ref[...])                                           # (Tq, E) f32
    out_ref[0] = out.astype(out_ref.dtype)


def _vmem_capacity_bytes():
    """Physical VMEM of the local TPU; falls back to 128 MiB if unqueryable."""
    try:
        return int(pltpu.get_tpu_info().vmem_capacity_bytes)
    except Exception:
        return 128 << 20


def _pick_q_tile(seq_len, vmem_capacity):
    # v7x has only 64 MiB of VMEM per TensorCore: cap the query tile at 256
    # there; keep the bigger 512 tile on 128-MiB parts (v5e / v6e).
    candidates = (512, 256, 128) if vmem_capacity >= (96 << 20) else (256, 128)
    for t in candidates:
        if seq_len % t == 0:
            return t
    return seq_len


def _pick_kv_chunk(seq_len, fused_width):
    """Rows per K/V-projection chunk: keeps the f32 intermediate under ~2 MiB."""
    budget_rows = max(8, (2 << 20) // (fused_width * 4))
    for c in (512, 256, 128, 64, 32, 16, 8):
        if c <= budget_rows and seq_len % c == 0:
            return c
    return seq_len


def _const_spec(shape):
    """Constant (weight) input: block index never changes across the grid, so a
    single pipeline buffer suffices — the default second buffer is pure VMEM
    waste (matters most on v7x). Falls back to the default if this JAX build
    does not expose pipeline_mode on BlockSpec."""
    index_map = lambda b, qi: (0,) * len(shape)
    try:
        return pl.BlockSpec(shape, index_map, pipeline_mode=pl.Buffered(1))
    except (TypeError, AttributeError):
        return pl.BlockSpec(shape, index_map)


def _vmem_plan_bytes(S, E, H, Dh, tq):
    HD = H * Dh
    bf16, f32 = 2, 4
    x_block = 2 * S * E * bf16                 # (1,S,E) double-buffered input
    bias_blk = 2 * S * f32
    weights = (E * HD + E * 2 * HD + HD * E) * bf16 + (HD + 2 * HD + E) * f32
    out_block = 2 * tq * E * f32
    scratch = 2 * H * S * Dh * bf16 + 2 * tq * HD * bf16
    return x_block + bias_blk + weights + out_block + scratch


def masked_multi_headed_self_attention(x, mask, params):
    """x: (B, S, E) f32, mask: (B, S) f32 (0/1). Returns (B, S, E) f32."""
    B, S, E = x.shape
    wq, bq, wk, bk, wv, bv, wo, bo = params
    H, _, Dh = wq.shape
    HD = H * Dh
    scale = 1.0 / math.sqrt(Dh)

    # Fuse per-head projection weights into lane-dense matrices; fold the
    # 1/sqrt(Dh) score scale into Wq/bq; cast matmul operands to bf16.
    wq_f = (jnp.transpose(wq, (1, 0, 2)).reshape(E, HD) * scale).astype(jnp.bfloat16)
    bq_f = (bq.reshape(1, HD) * scale).astype(jnp.float32)
    wk_f = jnp.transpose(wk, (1, 0, 2)).reshape(E, HD)
    wv_f = jnp.transpose(wv, (1, 0, 2)).reshape(E, HD)
    wkv_f = jnp.concatenate([wk_f, wv_f], axis=1).astype(jnp.bfloat16)
    bkv_f = jnp.concatenate([bk.reshape(1, HD), bv.reshape(1, HD)],
                            axis=1).astype(jnp.float32)
    wo_f = wo.reshape(HD, E).astype(jnp.bfloat16)      # concat layout (HD, E)
    bo_f = bo.reshape(1, E).astype(jnp.float32)

    x_bf = x.astype(jnp.bfloat16)
    # Mask -> additive bias on the key axis, computed once outside the kernel.
    bias = jnp.where(mask.reshape(B, 1, S) == 0.0,
                     jnp.float32(-1e9), jnp.float32(0.0))

    vmem_cap = _vmem_capacity_bytes()
    tq = _pick_q_tile(S, vmem_cap)
    n_q = S // tq
    kv_chunk = _pick_kv_chunk(S, 2 * HD)

    plan = _vmem_plan_bytes(S, E, H, Dh, tq)
    vmem_limit = int(min(max(2 * plan + (4 << 20), 32 << 20),
                         max(32 << 20, vmem_cap - (16 << 20))))

    kernel = functools.partial(mha_kernel, num_heads=H, head_dim=Dh,
                               q_tile=tq, kv_chunk=kv_chunk)

    return pl.pallas_call(
        kernel,
        out_shape=jax.ShapeDtypeStruct((B, S, E), jnp.float32),
        grid_spec=pltpu.PrefetchScalarGridSpec(
            num_scalar_prefetch=0,
            grid=(B, n_q),
            in_specs=[
                pl.BlockSpec((1, S, E), lambda b, qi: (b, 0, 0)),   # x (full seq)
                pl.BlockSpec((1, 1, S), lambda b, qi: (b, 0, 0)),   # mask bias
                _const_spec(wq_f.shape), _const_spec(bq_f.shape),
                _const_spec(wkv_f.shape), _const_spec(bkv_f.shape),
                _const_spec(wo_f.shape), _const_spec(bo_f.shape),
            ],
            out_specs=pl.BlockSpec((1, tq, E), lambda b, qi: (b, qi, 0)),
            scratch_shapes=[
                pltpu.VMEM((H, S, Dh), jnp.bfloat16),   # cached K (per head)
                pltpu.VMEM((H, S, Dh), jnp.bfloat16),   # cached V (per head)
                pltpu.VMEM((tq, HD), jnp.bfloat16),     # Q projection cache
                pltpu.VMEM((tq, HD), jnp.bfloat16),     # concat of head outputs
            ],
        ),
        compiler_params=pltpu.CompilerParams(
            # K/V scratch is filled at qi == 0 and reused across qi, so that
            # axis stays "arbitrary"; the batch axis splits across v7x's 2 TCs.
            dimension_semantics=("parallel", "arbitrary"),
            vmem_limit_bytes=vmem_limit),
    )(x_bf, bias, wq_f, bq_f, wkv_f, bkv_f, wo_f, bo_f)


def init_params(key, embedding_dimension, number_of_heads):
    E = embedding_dimension
    H = number_of_heads
    Dh = E // H
    ks = jax.random.split(key, 8)
    std = 0.02
    wq = jax.random.normal(ks[0], (H, E, Dh), jnp.float32) * std
    bq = jax.random.normal(ks[1], (H, Dh), jnp.float32) * std
    wk = jax.random.normal(ks[2], (H, E, Dh), jnp.float32) * std
    bk = jax.random.normal(ks[3], (H, Dh), jnp.float32) * std
    wv = jax.random.normal(ks[4], (H, E, Dh), jnp.float32) * std
    bv = jax.random.normal(ks[5], (H, Dh), jnp.float32) * std
    wo = jax.random.normal(ks[6], (H, Dh, E), jnp.float32) * std
    bo = jax.random.normal(ks[7], (1, E), jnp.float32) * std
    return (wq, bq, wk, bk, wv, bv, wo, bo)


def reference(x, mask, params):
    """Pure-JAX (f32) replica of the PyTorch module semantics."""
    wq, bq, wk, bk, wv, bv, wo, bo = params
    B, S, E = x.shape
    H, _, Dh = wq.shape
    outs = []
    m = mask.reshape(B, 1, S)
    for h in range(H):
        q = x @ wq[h] + bq[h]
        k = x @ wk[h] + bk[h]
        v = x @ wv[h] + bv[h]
        s = jnp.einsum("bqd,bkd->bqk", q, k) / math.sqrt(Dh)
        s = jnp.where(m == 0.0, -1e9, s)
        a = jax.nn.softmax(s, axis=-1)
        outs.append(jnp.einsum("bqk,bkd->bqd", a, v))
    cat = jnp.concatenate(outs, axis=2)                  # (B, S, H*Dh)
    wo_flat = wo.reshape(H * Dh, E)
    return cat @ wo_flat + bo[0]


if __name__ == "__main__":
    B, S, E, H = 2, 8, 32, 4
    key = jax.random.PRNGKey(0)
    kx, km, kp = jax.random.split(key, 3)

    x = jax.random.normal(kx, (B, S, E), jnp.float32)
    mask = (jax.random.uniform(km, (B, S)) > 0.3).astype(jnp.float32)
    # ensure at least one unmasked token per row
    mask = mask.at[:, 0].set(1.0)

    params = init_params(kp, E, H)

    out = masked_multi_headed_self_attention(x, mask, params)
    out = jax.block_until_ready(out)

    ref = reference(x, mask, params)
    assert out.shape == (B, S, E)
    # bf16 matmuls + approx reciprocal -> relaxed tolerance vs the f32 reference.
    assert jnp.allclose(out, ref, atol=1e-2, rtol=1e-2), "mismatch vs reference"
    print("KERNEL_OK")
</pallas_src>

<mosaic_0001>
module attributes {stable_mosaic.version = 11 : i64} {
  func.func @mha_kernel(%arg0: i32, %arg1: i32, %arg2: memref<1x8x32xbf16, #tpu.memory_space<vmem>>, %arg3: memref<1x1x8xf32, #tpu.memory_space<vmem>>, %arg4: memref<32x32xbf16, #tpu.memory_space<vmem>>, %arg5: memref<1x32xf32, #tpu.memory_space<vmem>>, %arg6: memref<32x64xbf16, #tpu.memory_space<vmem>>, %arg7: memref<1x64xf32, #tpu.memory_space<vmem>>, %arg8: memref<32x32xbf16, #tpu.memory_space<vmem>>, %arg9: memref<1x32xf32, #tpu.memory_space<vmem>>, %arg10: memref<1x8x32xf32, #tpu.memory_space<vmem>>, %arg11: memref<4x8x8xbf16, #tpu.memory_space<vmem>>, %arg12: memref<4x8x8xbf16, #tpu.memory_space<vmem>>, %arg13: memref<8x32xbf16, #tpu.memory_space<vmem>>, %arg14: memref<8x32xbf16, #tpu.memory_space<vmem>>) attributes {dimension_semantics = [#tpu.dimension_semantics<parallel>, #tpu.dimension_semantics<arbitrary>], iteration_bounds = array<i64: 2, 1>, scalar_prefetch = 0 : i64, scratch_operands = 4 : i64, tpu.core_type = #tpu.core_type<tc>, window_params = [{transform_indices = @transform_0, window_bounds = array<i64: 1, 8, 32>}, {transform_indices = @transform_1, window_bounds = array<i64: 1, 1, 8>}, {pipeline_mode = #tpu.pipeline_mode<synchronous>, transform_indices = @transform_2, window_bounds = array<i64: 32, 32>}, {pipeline_mode = #tpu.pipeline_mode<synchronous>, transform_indices = @transform_3, window_bounds = array<i64: 1, 32>}, {pipeline_mode = #tpu.pipeline_mode<synchronous>, transform_indices = @transform_4, window_bounds = array<i64: 32, 64>}, {pipeline_mode = #tpu.pipeline_mode<synchronous>, transform_indices = @transform_5, window_bounds = array<i64: 1, 64>}, {pipeline_mode = #tpu.pipeline_mode<synchronous>, transform_indices = @transform_6, window_bounds = array<i64: 32, 32>}, {pipeline_mode = #tpu.pipeline_mode<synchronous>, transform_indices = @transform_7, window_bounds = array<i64: 1, 32>}, {transform_indices = @transform_8, window_bounds = array<i64: 1, 8, 32>}]} {
    %c0_i32 = arith.constant 0 : i32
    %0 = arith.cmpi eq, %arg1, %c0_i32 : i32
    %1 = arith.extui %0 : i1 to i32
    %c0_i32_0 = arith.constant 0 : i32
    %2 = arith.cmpi ne, %1, %c0_i32_0 : i32
    scf.if %2 {
      %c0_71 = arith.constant 0 : index
      %c0_72 = arith.constant 0 : index
      %c0_73 = arith.constant 0 : index
      %114 = vector.load %arg2[%c0_71, %c0_72, %c0_73] : memref<1x8x32xbf16, #tpu.memory_space<vmem>>, vector<1x8x32xbf16>
      %115 = vector.shape_cast %114 : vector<1x8x32xbf16> to vector<8x32xbf16>
      %c0_74 = arith.constant 0 : index
      %c0_75 = arith.constant 0 : index
      %116 = vector.load %arg6[%c0_74, %c0_75] : memref<32x64xbf16, #tpu.memory_space<vmem>>, vector<32x64xbf16>
      %cst_76 = arith.constant dense<0.000000e+00> : vector<8x64xf32>
      %117 = tpu.matmul %115, %116, %cst_76 {dimension_numbers = #tpu.dot_dimension_numbers<[1], [0], [0], [1], [0, 0, 1, 1], [], []>} : vector<8x32xbf16>, vector<32x64xbf16>, vector<8x64xf32> -> vector<8x64xf32>
      %c0_77 = arith.constant 0 : index
      %c0_78 = arith.constant 0 : index
      %118 = vector.load %arg7[%c0_77, %c0_78] : memref<1x64xf32, #tpu.memory_space<vmem>>, vector<1x64xf32>
      %119 = vector.broadcast %118 : vector<1x64xf32> to vector<8x64xf32>
      %120 = arith.addf %117, %119 : vector<8x64xf32>
      %121 = vector.extract_strided_slice %120 {offsets = [0, 0], sizes = [8, 8], strides = [1, 1]} : vector<8x64xf32> to vector<8x8xf32>
      %122 = arith.truncf %121 : vector<8x8xf32> to vector<8x8xbf16>
      %c0_79 = arith.constant 0 : index
      %c0_80 = arith.constant 0 : index
      %c0_81 = arith.constant 0 : index
      %123 = vector.load %arg11[%c0_79, %c0_80, %c0_81] : memref<4x8x8xbf16, #tpu.memory_space<vmem>>, vector<1x8x8xbf16>
      %124 = vector.shape_cast %123 : vector<1x8x8xbf16> to vector<8x8xbf16>
      %125 = vector.shape_cast %122 : vector<8x8xbf16> to vector<1x8x8xbf16>
      tpu.vector_store %arg11[%c0_79, %c0_80, %c0_81], %125 {strides = array<i32>} : memref<4x8x8xbf16, #tpu.memory_space<vmem>>, vector<1x8x8xbf16>,
      %126 = vector.extract_strided_slice %120 {offsets = [0, 32], sizes = [8, 8], strides = [1, 1]} : vector<8x64xf32> to vector<8x8xf32>
      %127 = arith.truncf %126 : vector<8x8xf32> to vector<8x8xbf16>
      %c0_82 = arith.constant 0 : index
      %c0_83 = arith.constant 0 : index
      %c0_84 = arith.constant 0 : index
      %128 = vector.load %arg12[%c0_82, %c0_83, %c0_84] : memref<4x8x8xbf16, #tpu.memory_space<vmem>>, vector<1x8x8xbf16>
      %129 = vector.shape_cast %128 : vector<1x8x8xbf16> to vector<8x8xbf16>
      %130 = vector.shape_cast %127 : vector<8x8xbf16> to vector<1x8x8xbf16>
      tpu.vector_store %arg12[%c0_82, %c0_83, %c0_84], %130 {strides = array<i32>} : memref<4x8x8xbf16, #tpu.memory_space<vmem>>, vector<1x8x8xbf16>,
      %131 = vector.extract_strided_slice %120 {offsets = [0, 8], sizes = [8, 8], strides = [1, 1]} : vector<8x64xf32> to vector<8x8xf32>
      %132 = arith.truncf %131 : vector<8x8xf32> to vector<8x8xbf16>
      %c1_85 = arith.constant 1 : index
      %c0_86 = arith.constant 0 : index
      %c0_87 = arith.constant 0 : index
      %133 = vector.load %arg11[%c1_85, %c0_86, %c0_87] : memref<4x8x8xbf16, #tpu.memory_space<vmem>>, vector<1x8x8xbf16>
      %134 = vector.shape_cast %133 : vector<1x8x8xbf16> to vector<8x8xbf16>
      %135 = vector.shape_cast %132 : vector<8x8xbf16> to vector<1x8x8xbf16>
      tpu.vector_store %arg11[%c1_85, %c0_86, %c0_87], %135 {strides = array<i32>} : memref<4x8x8xbf16, #tpu.memory_space<vmem>>, vector<1x8x8xbf16>,
      %136 = vector.extract_strided_slice %120 {offsets = [0, 40], sizes = [8, 8], strides = [1, 1]} : vector<8x64xf32> to vector<8x8xf32>
      %137 = arith.truncf %136 : vector<8x8xf32> to vector<8x8xbf16>
      %c1_88 = arith.constant 1 : index
      %c0_89 = arith.constant 0 : index
      %c0_90 = arith.constant 0 : index
      %138 = vector.load %arg12[%c1_88, %c0_89, %c0_90] : memref<4x8x8xbf16, #tpu.memory_space<vmem>>, vector<1x8x8xbf16>
      %139 = vector.shape_cast %138 : vector<1x8x8xbf16> to vector<8x8xbf16>
      %140 = vector.shape_cast %137 : vector<8x8xbf16> to vector<1x8x8xbf16>
      tpu.vector_store %arg12[%c1_88, %c0_89, %c0_90], %140 {strides = array<i32>} : memref<4x8x8xbf16, #tpu.memory_space<vmem>>, vector<1x8x8xbf16>,
      %141 = vector.extract_strided_slice %120 {offsets = [0, 16], sizes = [8, 8], strides = [1, 1]} : vector<8x64xf32> to vector<8x8xf32>
      %142 = arith.truncf %141 : vector<8x8xf32> to vector<8x8xbf16>
      %c2_91 = arith.constant 2 : index
      %c0_92 = arith.constant 0 : index
      %c0_93 = arith.constant 0 : index
      %143 = vector.load %arg11[%c2_91, %c0_92, %c0_93] : memref<4x8x8xbf16, #tpu.memory_space<vmem>>, vector<1x8x8xbf16>
      %144 = vector.shape_cast %143 : vector<1x8x8xbf16> to vector<8x8xbf16>
      %145 = vector.shape_cast %142 : vector<8x8xbf16> to vector<1x8x8xbf16>
      tpu.vector_store %arg11[%c2_91, %c0_92, %c0_93], %145 {strides = array<i32>} : memref<4x8x8xbf16, #tpu.memory_space<vmem>>, vector<1x8x8xbf16>,
      %146 = vector.extract_strided_slice %120 {offsets = [0, 48], sizes = [8, 8], strides = [1, 1]} : vector<8x64xf32> to vector<8x8xf32>
      %147 = arith.truncf %146 : vector<8x8xf32> to vector<8x8xbf16>
      %c2_94 = arith.constant 2 : index
      %c0_95 = arith.constant 0 : index
      %c0_96 = arith.constant 0 : index
      %148 = vector.load %arg12[%c2_94, %c0_95, %c0_96] : memref<4x8x8xbf16, #tpu.memory_space<vmem>>, vector<1x8x8xbf16>
      %149 = vector.shape_cast %148 : vector<1x8x8xbf16> to vector<8x8xbf16>
      %150 = vector.shape_cast %147 : vector<8x8xbf16> to vector<1x8x8xbf16>
      tpu.vector_store %arg12[%c2_94, %c0_95, %c0_96], %150 {strides = array<i32>} : memref<4x8x8xbf16, #tpu.memory_space<vmem>>, vector<1x8x8xbf16>,
      %151 = vector.extract_strided_slice %120 {offsets = [0, 24], sizes = [8, 8], strides = [1, 1]} : vector<8x64xf32> to vector<8x8xf32>
      %152 = arith.truncf %151 : vector<8x8xf32> to vector<8x8xbf16>
      %c3_97 = arith.constant 3 : index
      %c0_98 = arith.constant 0 : index
      %c0_99 = arith.constant 0 : index
      %153 = vector.load %arg11[%c3_97, %c0_98, %c0_99] : memref<4x8x8xbf16, #tpu.memory_space<vmem>>, vector<1x8x8xbf16>
      %154 = vector.shape_cast %153 : vector<1x8x8xbf16> to vector<8x8xbf16>
      %155 = vector.shape_cast %152 : vector<8x8xbf16> to vector<1x8x8xbf16>
      tpu.vector_store %arg11[%c3_97, %c0_98, %c0_99], %155 {strides = array<i32>} : memref<4x8x8xbf16, #tpu.memory_space<vmem>>, vector<1x8x8xbf16>,
      %156 = vector.extract_strided_slice %120 {offsets = [0, 56], sizes = [8, 8], strides = [1, 1]} : vector<8x64xf32> to vector<8x8xf32>
      %157 = arith.truncf %156 : vector<8x8xf32> to vector<8x8xbf16>
      %c3_100 = arith.constant 3 : index
      %c0_101 = arith.constant 0 : index
      %c0_102 = arith.constant 0 : index
      %158 = vector.load %arg12[%c3_100, %c0_101, %c0_102] : memref<4x8x8xbf16, #tpu.memory_space<vmem>>, vector<1x8x8xbf16>
      %159 = vector.shape_cast %158 : vector<1x8x8xbf16> to vector<8x8xbf16>
      %160 = vector.shape_cast %157 : vector<8x8xbf16> to vector<1x8x8xbf16>
      tpu.vector_store %arg12[%c3_100, %c0_101, %c0_102], %160 {strides = array<i32>} : memref<4x8x8xbf16, #tpu.memory_space<vmem>>, vector<1x8x8xbf16>,
    } else {
    }
    %c8_i32 = arith.constant 8 : i32
    %3 = arith.muli %arg1, %c8_i32 : i32
    %4 = tpu.assume_multiple %3, 8 : i32
    %c0 = arith.constant 0 : index
    %5 = arith.index_cast %4 : i32 to index
    %c0_1 = arith.constant 0 : index
    %6 = vector.load %arg2[%c0, %5, %c0_1] : memref<1x8x32xbf16, #tpu.memory_space<vmem>>, vector<1x8x32xbf16>
    %7 = vector.shape_cast %6 : vector<1x8x32xbf16> to vector<8x32xbf16>
    %c0_2 = arith.constant 0 : index
    %c0_3 = arith.constant 0 : index
    %8 = vector.load %arg4[%c0_2, %c0_3] : memref<32x32xbf16, #tpu.memory_space<vmem>>, vector<32x32xbf16>
    %cst = arith.constant dense<0.000000e+00> : vector<8x32xf32>
    %9 = tpu.matmul %7, %8, %cst {dimension_numbers = #tpu.dot_dimension_numbers<[1], [0], [0], [1], [0, 0, 1, 1], [], []>} : vector<8x32xbf16>, vector<32x32xbf16>, vector<8x32xf32> -> vector<8x32xf32>
    %c0_4 = arith.constant 0 : index
    %c0_5 = arith.constant 0 : index
    %10 = vector.load %arg5[%c0_4, %c0_5] : memref<1x32xf32, #tpu.memory_space<vmem>>, vector<1x32xf32>
    %11 = vector.broadcast %10 : vector<1x32xf32> to vector<8x32xf32>
    %12 = arith.addf %9, %11 : vector<8x32xf32>
    %13 = arith.truncf %12 : vector<8x32xf32> to vector<8x32xbf16>
    %c0_6 = arith.constant 0 : index
    %c0_7 = arith.constant 0 : index
    %14 = vector.load %arg13[%c0_6, %c0_7] : memref<8x32xbf16, #tpu.memory_space<vmem>>, vector<8x32xbf16>
    tpu.vector_store %arg13[%c0_6, %c0_7], %13 {strides = array<i32>} : memref<8x32xbf16, #tpu.memory_space<vmem>>, vector<8x32xbf16>,
    %c0_8 = arith.constant 0 : index
    %c0_9 = arith.constant 0 : index
    %c0_10 = arith.constant 0 : index
    %15 = vector.load %arg3[%c0_8, %c0_9, %c0_10] : memref<1x1x8xf32, #tpu.memory_space<vmem>>, vector<1x1x8xf32>
    %16 = vector.shape_cast %15 : vector<1x1x8xf32> to vector<1x8xf32>
    %c0_11 = arith.constant 0 : index
    %c0_12 = arith.constant 0 : index
    %17 = vector.load %arg13[%c0_11, %c0_12] : memref<8x32xbf16, #tpu.memory_space<vmem>>, vector<8x8xbf16>
    %c0_13 = arith.constant 0 : index
    %c0_14 = arith.constant 0 : index
    %c0_15 = arith.constant 0 : index
    %18 = vector.load %arg11[%c0_13, %c0_14, %c0_15] : memref<4x8x8xbf16, #tpu.memory_space<vmem>>, vector<1x8x8xbf16>
    %19 = vector.shape_cast %18 : vector<1x8x8xbf16> to vector<8x8xbf16>
    %c0_16 = arith.constant 0 : index
    %c0_17 = arith.constant 0 : index
    %c0_18 = arith.constant 0 : index
    %20 = vector.load %arg12[%c0_16, %c0_17, %c0_18] : memref<4x8x8xbf16, #tpu.memory_space<vmem>>, vector<1x8x8xbf16>
    %21 = vector.shape_cast %20 : vector<1x8x8xbf16> to vector<8x8xbf16>
    %cst_19 = arith.constant dense<0.000000e+00> : vector<8x8xf32>
    %22 = tpu.matmul %17, %19, %cst_19 {dimension_numbers = #tpu.dot_dimension_numbers<[1], [1], [0], [0], [0, 0, 1, 0], [], []>} : vector<8x8xbf16>, vector<8x8xbf16>, vector<8x8xf32> -> vector<8x8xf32>
    %23 = vector.broadcast %16 : vector<1x8xf32> to vector<8x8xf32>
    %24 = arith.addf %22, %23 : vector<8x8xf32>
    %cst_20 = arith.constant dense<0xFF800000> : vector<8xf32>
    %25 = vector.multi_reduction <maximumf>, %24, %cst_20 [1] : vector<8x8xf32> to vector<8xf32>
    %26 = vector.shape_cast %25 : vector<8xf32> to vector<8x1xf32>
    %27 = vector.broadcast %26 : vector<8x1xf32> to vector<8x8xf32>
    %28 = arith.subf %24, %27 : vector<8x8xf32>
    %29 = math.exp %28 : vector<8x8xf32>
    %cst_21 = arith.constant dense<0.000000e+00> : vector<8xf32>
    %30 = vector.multi_reduction <add>, %29, %cst_21 [1] : vector<8x8xf32> to vector<8xf32>
    %31 = vector.shape_cast %30 : vector<8xf32> to vector<8x1xf32>
    %32 = arith.truncf %29 : vector<8x8xf32> to vector<8x8xbf16>
    %cst_22 = arith.constant dense<0.000000e+00> : vector<8x8xf32>
    %33 = tpu.matmul %32, %21, %cst_22 {dimension_numbers = #tpu.dot_dimension_numbers<[1], [0], [0], [1], [0, 0, 1, 1], [], []>} : vector<8x8xbf16>, vector<8x8xbf16>, vector<8x8xf32> -> vector<8x8xf32>
    %34 = tpu.reciprocal %31 {approx = true} : vector<8x1xf32> -> vector<8x1xf32>
    %35 = vector.broadcast %34 : vector<8x1xf32> to vector<8x8xf32>
    %36 = arith.mulf %33, %35 : vector<8x8xf32>
    %37 = arith.truncf %36 : vector<8x8xf32> to vector<8x8xbf16>
    %c0_23 = arith.constant 0 : index
    %c0_24 = arith.constant 0 : index
    %38 = vector.load %arg14[%c0_23, %c0_24] : memref<8x32xbf16, #tpu.memory_space<vmem>>, vector<8x8xbf16>
    tpu.vector_store %arg14[%c0_23, %c0_24], %37 {strides = array<i32>} : memref<8x32xbf16, #tpu.memory_space<vmem>>, vector<8x8xbf16>,
    %c0_25 = arith.constant 0 : index
    %c8 = arith.constant 8 : index
    %39 = vector.load %arg13[%c0_25, %c8] : memref<8x32xbf16, #tpu.memory_space<vmem>>, vector<8x8xbf16>
    %c1 = arith.constant 1 : index
    %c0_26 = arith.constant 0 : index
    %c0_27 = arith.constant 0 : index
    %40 = vector.load %arg11[%c1, %c0_26, %c0_27] : memref<4x8x8xbf16, #tpu.memory_space<vmem>>, vector<1x8x8xbf16>
    %41 = vector.shape_cast %40 : vector<1x8x8xbf16> to vector<8x8xbf16>
    %c1_28 = arith.constant 1 : index
    %c0_29 = arith.constant 0 : index
    %c0_30 = arith.constant 0 : index
    %42 = vector.load %arg12[%c1_28, %c0_29, %c0_30] : memref<4x8x8xbf16, #tpu.memory_space<vmem>>, vector<1x8x8xbf16>
    %43 = vector.shape_cast %42 : vector<1x8x8xbf16> to vector<8x8xbf16>
    %cst_31 = arith.constant dense<0.000000e+00> : vector<8x8xf32>
    %44 = tpu.matmul %39, %41, %cst_31 {dimension_numbers = #tpu.dot_dimension_numbers<[1], [1], [0], [0], [0, 0, 1, 0], [], []>} : vector<8x8xbf16>, vector<8x8xbf16>, vector<8x8xf32> -> vector<8x8xf32>
    %45 = vector.broadcast %16 : vector<1x8xf32> to vector<8x8xf32>
    %46 = arith.addf %44, %45 : vector<8x8xf32>
    %cst_32 = arith.constant dense<0xFF800000> : vector<8xf32>
    %47 = vector.multi_reduction <maximumf>, %46, %cst_32 [1] : vector<8x8xf32> to vector<8xf32>
    %48 = vector.shape_cast %47 : vector<8xf32> to vector<8x1xf32>
    %49 = vector.broadcast %48 : vector<8x1xf32> to vector<8x8xf32>
    %50 = arith.subf %46, %49 : vector<8x8xf32>
    %51 = math.exp %50 : vector<8x8xf32>
    %cst_33 = arith.constant dense<0.000000e+00> : vector<8xf32>
    %52 = vector.multi_reduction <add>, %51, %cst_33 [1] : vector<8x8xf32> to vector<8xf32>
    %53 = vector.shape_cast %52 : vector<8xf32> to vector<8x1xf32>
    %54 = arith.truncf %51 : vector<8x8xf32> to vector<8x8xbf16>
    %cst_34 = arith.constant dense<0.000000e+00> : vector<8x8xf32>
    %55 = tpu.matmul %54, %43, %cst_34 {dimension_numbers = #tpu.dot_dimension_numbers<[1], [0], [0], [1], [0, 0, 1, 1], [], []>} : vector<8x8xbf16>, vector<8x8xbf16>, vector<8x8xf32> -> vector<8x8xf32>
    %56 = tpu.reciprocal %53 {approx = true} : vector<8x1xf32> -> vector<8x1xf32>
    %57 = vector.broadcast %56 : vector<8x1xf32> to vector<8x8xf32>
    %58 = arith.mulf %55, %57 : vector<8x8xf32>
    %59 = arith.truncf %58 : vector<8x8xf32> to vector<8x8xbf16>
    %c0_35 = arith.constant 0 : index
    %c8_36 = arith.constant 8 : index
    %60 = vector.load %arg14[%c0_35, %c8_36] : memref<8x32xbf16, #tpu.memory_space<vmem>>, vector<8x8xbf16>
    tpu.vector_store %arg14[%c0_35, %c8_36], %59 {strides = array<i32>} : memref<8x32xbf16, #tpu.memory_space<vmem>>, vector<8x8xbf16>,
    %c0_37 = arith.constant 0 : index
    %c16 = arith.constant 16 : index
    %61 = vector.load %arg13[%c0_37, %c16] : memref<8x32xbf16, #tpu.memory_space<vmem>>, vector<8x8xbf16>
    %c2 = arith.constant 2 : index
    %c0_38 = arith.constant 0 : index
    %c0_39 = arith.constant 0 : index
    %62 = vector.load %arg11[%c2, %c0_38, %c0_39] : memref<4x8x8xbf16, #tpu.memory_space<vmem>>, vector<1x8x8xbf16>
    %63 = vector.shape_cast %62 : vector<1x8x8xbf16> to vector<8x8xbf16>
    %c2_40 = arith.constant 2 : index
    %c0_41 = arith.constant 0 : index
    %c0_42 = arith.constant 0 : index
    %64 = vector.load %arg12[%c2_40, %c0_41, %c0_42] : memref<4x8x8xbf16, #tpu.memory_space<vmem>>, vector<1x8x8xbf16>
    %65 = vector.shape_cast %64 : vector<1x8x8xbf16> to vector<8x8xbf16>
    %cst_43 = arith.constant dense<0.000000e+00> : vector<8x8xf32>
    %66 = tpu.matmul %61, %63, %cst_43 {dimension_numbers = #tpu.dot_dimension_numbers<[1], [1], [0], [0], [0, 0, 1, 0], [], []>} : vector<8x8xbf16>, vector<8x8xbf16>, vector<8x8xf32> -> vector<8x8xf32>
    %67 = vector.broadcast %16 : vector<1x8xf32> to vector<8x8xf32>
    %68 = arith.addf %66, %67 : vector<8x8xf32>
    %cst_44 = arith.constant dense<0xFF800000> : vector<8xf32>
    %69 = vector.multi_reduction <maximumf>, %68, %cst_44 [1] : vector<8x8xf32> to vector<8xf32>
    %70 = vector.shape_cast %69 : vector<8xf32> to vector<8x1xf32>
    %71 = vector.broadcast %70 : vector<8x1xf32> to vector<8x8xf32>
    %72 = arith.subf %68, %71 : vector<8x8xf32>
    %73 = math.exp %72 : vector<8x8xf32>
    %cst_45 = arith.constant dense<0.000000e+00> : vector<8xf32>
    %74 = vector.multi_reduction <add>, %73, %cst_45 [1] : vector<8x8xf32> to vector<8xf32>
    %75 = vector.shape_cast %74 : vector<8xf32> to vector<8x1xf32>
    %76 = arith.truncf %73 : vector<8x8xf32> to vector<8x8xbf16>
    %cst_46 = arith.constant dense<0.000000e+00> : vector<8x8xf32>
    %77 = tpu.matmul %76, %65, %cst_46 {dimension_numbers = #tpu.dot_dimension_numbers<[1], [0], [0], [1], [0, 0, 1, 1], [], []>} : vector<8x8xbf16>, vector<8x8xbf16>, vector<8x8xf32> -> vector<8x8xf32>
    %78 = tpu.reciprocal %75 {approx = true} : vector<8x1xf32> -> vector<8x1xf32>
    %79 = vector.broadcast %78 : vector<8x1xf32> to vector<8x8xf32>
    %80 = arith.mulf %77, %79 : vector<8x8xf32>
    %81 = arith.truncf %80 : vector<8x8xf32> to vector<8x8xbf16>
    %c0_47 = arith.constant 0 : index
    %c16_48 = arith.constant 16 : index
    %82 = vector.load %arg14[%c0_47, %c16_48] : memref<8x32xbf16, #tpu.memory_space<vmem>>, vector<8x8xbf16>
    tpu.vector_store %arg14[%c0_47, %c16_48], %81 {strides = array<i32>} : memref<8x32xbf16, #tpu.memory_space<vmem>>, vector<8x8xbf16>,
    %c0_49 = arith.constant 0 : index
    %c24 = arith.constant 24 : index
    %83 = vector.load %arg13[%c0_49, %c24] : memref<8x32xbf16, #tpu.memory_space<vmem>>, vector<8x8xbf16>
    %c3 = arith.constant 3 : index
    %c0_50 = arith.constant 0 : index
    %c0_51 = arith.constant 0 : index
    %84 = vector.load %arg11[%c3, %c0_50, %c0_51] : memref<4x8x8xbf16, #tpu.memory_space<vmem>>, vector<1x8x8xbf16>
    %85 = vector.shape_cast %84 : vector<1x8x8xbf16> to vector<8x8xbf16>
    %c3_52 = arith.constant 3 : index
    %c0_53 = arith.constant 0 : index
    %c0_54 = arith.constant 0 : index
    %86 = vector.load %arg12[%c3_52, %c0_53, %c0_54] : memref<4x8x8xbf16, #tpu.memory_space<vmem>>, vector<1x8x8xbf16>
    %87 = vector.shape_cast %86 : vector<1x8x8xbf16> to vector<8x8xbf16>
    %cst_55 = arith.constant dense<0.000000e+00> : vector<8x8xf32>
    %88 = tpu.matmul %83, %85, %cst_55 {dimension_numbers = #tpu.dot_dimension_numbers<[1], [1], [0], [0], [0, 0, 1, 0], [], []>} : vector<8x8xbf16>, vector<8x8xbf16>, vector<8x8xf32> -> vector<8x8xf32>
    %89 = vector.broadcast %16 : vector<1x8xf32> to vector<8x8xf32>
    %90 = arith.addf %88, %89 : vector<8x8xf32>
    %cst_56 = arith.constant dense<0xFF800000> : vector<8xf32>
    %91 = vector.multi_reduction <maximumf>, %90, %cst_56 [1] : vector<8x8xf32> to vector<8xf32>
    %92 = vector.shape_cast %91 : vector<8xf32> to vector<8x1xf32>
    %93 = vector.broadcast %92 : vector<8x1xf32> to vector<8x8xf32>
    %94 = arith.subf %90, %93 : vector<8x8xf32>
    %95 = math.exp %94 : vector<8x8xf32>
    %cst_57 = arith.constant dense<0.000000e+00> : vector<8xf32>
    %96 = vector.multi_reduction <add>, %95, %cst_57 [1] : vector<8x8xf32> to vector<8xf32>
    %97 = vector.shape_cast %96 : vector<8xf32> to vector<8x1xf32>
    %98 = arith.truncf %95 : vector<8x8xf32> to vector<8x8xbf16>
    %cst_58 = arith.constant dense<0.000000e+00> : vector<8x8xf32>
    %99 = tpu.matmul %98, %87, %cst_58 {dimension_numbers = #tpu.dot_dimension_numbers<[1], [0], [0], [1], [0, 0, 1, 1], [], []>} : vector<8x8xbf16>, vector<8x8xbf16>, vector<8x8xf32> -> vector<8x8xf32>
    %100 = tpu.reciprocal %97 {approx = true} : vector<8x1xf32> -> vector<8x1xf32>
    %101 = vector.broadcast %100 : vector<8x1xf32> to vector<8x8xf32>
    %102 = arith.mulf %99, %101 : vector<8x8xf32>
    %103 = arith.truncf %102 : vector<8x8xf32> to vector<8x8xbf16>
    %c0_59 = arith.constant 0 : index
    %c24_60 = arith.constant 24 : index
    %104 = vector.load %arg14[%c0_59, %c24_60] : memref<8x32xbf16, #tpu.memory_space<vmem>>, vector<8x8xbf16>
    tpu.vector_store %arg14[%c0_59, %c24_60], %103 {strides = array<i32>} : memref<8x32xbf16, #tpu.memory_space<vmem>>, vector<8x8xbf16>,
    %c0_61 = arith.constant 0 : index
    %c0_62 = arith.constant 0 : index
    %105 = vector.load %arg14[%c0_61, %c0_62] : memref<8x32xbf16, #tpu.memory_space<vmem>>, vector<8x32xbf16>
    %c0_63 = arith.constant 0 : index
    %c0_64 = arith.constant 0 : index
    %106 = vector.load %arg8[%c0_63, %c0_64] : memref<32x32xbf16, #tpu.memory_space<vmem>>, vector<32x32xbf16>
    %cst_65 = arith.constant dense<0.000000e+00> : vector<8x32xf32>
    %107 = tpu.matmul %105, %106, %cst_65 {dimension_numbers = #tpu.dot_dimension_numbers<[1], [0], [0], [1], [0, 0, 1, 1], [], []>} : vector<8x32xbf16>, vector<32x32xbf16>, vector<8x32xf32> -> vector<8x32xf32>
    %c0_66 = arith.constant 0 : index
    %c0_67 = arith.constant 0 : index
    %108 = vector.load %arg9[%c0_66, %c0_67] : memref<1x32xf32, #tpu.memory_space<vmem>>, vector<1x32xf32>
    %109 = vector.broadcast %108 : vector<1x32xf32> to vector<8x32xf32>
    %110 = arith.addf %107, %109 : vector<8x32xf32>
    %c0_68 = arith.constant 0 : index
    %c0_69 = arith.constant 0 : index
    %c0_70 = arith.constant 0 : index
    %111 = vector.load %arg10[%c0_68, %c0_69, %c0_70] : memref<1x8x32xf32, #tpu.memory_space<vmem>>, vector<1x8x32xf32>
    %112 = vector.shape_cast %111 : vector<1x8x32xf32> to vector<8x32xf32>
    %113 = vector.shape_cast %110 : vector<8x32xf32> to vector<1x8x32xf32>
    tpu.vector_store %arg10[%c0_68, %c0_69, %c0_70], %113 {strides = array<i32>} : memref<1x8x32xf32, #tpu.memory_space<vmem>>, vector<1x8x32xf32>,
    return
  }
  func.func @transform_0(%arg0: i32, %arg1: i32) -> (i32, i32, i32) {
    %c0_i32 = arith.constant 0 : i32
    %c0_i32_0 = arith.constant 0 : i32
    %c0_i32_1 = arith.constant 0 : i32
    return %arg0, %c0_i32, %c0_i32_0 : i32, i32, i32
  }
  func.func @transform_1(%arg0: i32, %arg1: i32) -> (i32, i32, i32) {
    %c0_i32 = arith.constant 0 : i32
    %c0_i32_0 = arith.constant 0 : i32
    %c0_i32_1 = arith.constant 0 : i32
    return %arg0, %c0_i32, %c0_i32_0 : i32, i32, i32
  }
  func.func @transform_2(%arg0: i32, %arg1: i32) -> (i32, i32) {
    %c0_i32 = arith.constant 0 : i32
    %c0_i32_0 = arith.constant 0 : i32
    %c0_i32_1 = arith.constant 0 : i32
    return %c0_i32, %c0_i32_0 : i32, i32
  }
  func.func @transform_3(%arg0: i32, %arg1: i32) -> (i32, i32) {
    %c0_i32 = arith.constant 0 : i32
    %c0_i32_0 = arith.constant 0 : i32
    %c0_i32_1 = arith.constant 0 : i32
    return %c0_i32, %c0_i32_0 : i32, i32
  }
  func.func @transform_4(%arg0: i32, %arg1: i32) -> (i32, i32) {
    %c0_i32 = arith.constant 0 : i32
    %c0_i32_0 = arith.constant 0 : i32
    %c0_i32_1 = arith.constant 0 : i32
    return %c0_i32, %c0_i32_0 : i32, i32
  }
  func.func @transform_5(%arg0: i32, %arg1: i32) -> (i32, i32) {
    %c0_i32 = arith.constant 0 : i32
    %c0_i32_0 = arith.constant 0 : i32
    %c0_i32_1 = arith.constant 0 : i32
    return %c0_i32, %c0_i32_0 : i32, i32
  }
  func.func @transform_6(%arg0: i32, %arg1: i32) -> (i32, i32) {
    %c0_i32 = arith.constant 0 : i32
    %c0_i32_0 = arith.constant 0 : i32
    %c0_i32_1 = arith.constant 0 : i32
    return %c0_i32, %c0_i32_0 : i32, i32
  }
  func.func @transform_7(%arg0: i32, %arg1: i32) -> (i32, i32) {
    %c0_i32 = arith.constant 0 : i32
    %c0_i32_0 = arith.constant 0 : i32
    %c0_i32_1 = arith.constant 0 : i32
    return %c0_i32, %c0_i32_0 : i32, i32
  }
  func.func @transform_8(%arg0: i32, %arg1: i32) -> (i32, i32, i32) {
    %c0_i32 = arith.constant 0 : i32
    %c0_i32_0 = arith.constant 0 : i32
    return %arg0, %arg1, %c0_i32 : i32, i32, i32
  }
}

</mosaic_0001>

<bundles_post_ra>
// kernel: tpu_custom_call.1
= control target key start
LH: loop header
LB: loop body
LE: loop exit
PB: predicated region body
PF: predicated region fallthrough
CT: control target
= control target key end

     0   :  { %s1726_s0 = inlined_call_operand.hbm [shape: bf16[2,8,32], index: 0, kind: input, shape index: {}]   ;;  %s1727_s1 = inlined_call_operand.hbm [shape: f32[2,1,8], index: 1, kind: input, shape index: {}]   ;;  %s1728_s2 = inlined_call_operand.hbm [shape: bf16[32,32], index: 2, kind: input, shape index: {}]   ;;  %s1729_s3 = inlined_call_operand.vmem [shape: f32[1,32], index: 3, kind: input, shape index: {}]   ;;  %s1730_s4 = inlined_call_operand.hbm [shape: bf16[32,64], index: 4, kind: input, shape index: {}]   ;;  %s1731_s5 = inlined_call_operand.vmem [shape: f32[1,64], index: 5, kind: input, shape index: {}]   ;;  %s1732_s6 = inlined_call_operand.hbm [shape: bf16[32,32], index: 6, kind: input, shape index: {}]   ;;  %s1733_s7 = inlined_call_operand.vmem [shape: f32[1,32], index: 7, kind: input, shape index: {}]   ;;  %s1734_s8 = inlined_call_operand.hbm [shape: f32[2,8,32], index: 8, kind: output, shape index: {}]  }
   0x1   :  { %1739 = sst [smem:[#allocation26_spill]] %s1728_s2 }
   0x2   :  { %1740 = sst [smem:[#allocation27_spill]] %s1730_s4 }
   0x3   :  { %1741 = sst [smem:[#allocation28_spill]] %s1732_s6 }
   0x4   :  { %1742 = sst [smem:[#allocation29_spill]] %s1733_s7 }
   0x5   :  { %13 = vsyncpa [#allocation7], 0 }
   0x6   :  { %15 = vsyncpa [#allocation7 + $0x1], 0 }
   0x7   :  { %16 = vsyncpa [#allocation10], 0 }
   0x8   :  { %18 = vsyncpa [#allocation10 + $0x1], 0 }
   0x9   :  { %19 = vsyncpa [#allocation13], 0 }
   0xa   :  { %20 = vsyncpa [#allocation8], 0 }
   0xb   :  { %22 = vsyncpa [#allocation8 + $0x1], 0  ;;  %s1490_s27 = smov 0   ;;  %s1492_s28 = smov 0  }
   0xc   :  { %s1494_s29 = smov 0   ;;  %s1496_s30 = smov 0  }
   0xd   :  { %s1498_s9 = smov 0   ;;  %s1500_s10 = smov 0  }
   0xe LB: > { %1743 = sst [smem:[#allocation21_spill]] %s1408_s27  ;;  %s1521_s11 = sadd.s32 4294967295, %s1428_s10   ;;  %s1428_s10 = sphi %s1500_s10, %s28_s10   ;;  %s1424_s9 = sphi %s1498_s9, %s1766_s9   ;;  %s1420_s30 = sphi %s1496_s30, %s1765_s30   ;;  %s1416_s29 = sphi %s1494_s29, %s1761_s29   ;;  %s1412_s28 = sphi %s1492_s28, %s1764_s28   ;;  %s1408_s27 = sphi %s1490_s27, %s1763_s27  }
   0xf   : > { %1744 = sst [smem:[#allocation22_spill]] %s1416_s29  ;;  %p996_p0 = scmp.ge.s32.totalorder %s1428_s10, 1 }
  0x10   : > { %p61_p1 = scmp.eq.s32.totalorder %s1521_s11, 0  ;;  %p251_p2 = scmp.lt.s32.totalorder %s1428_s10, 3 }
  0x11   : > { %s1745_s2 = sld [smem:[#allocation26_spill]]  ;;  %s1430_s16 = smov [#allocation11]  }
  0x12   : > { %p1529_p3 = pnand %p996_p0, %p251_p2  ;;  %s264_s17 = sshll.u32 %s1430_s16, 4  ;;  %s265_s17 = int_to_ptr.vmem [resolvable:$true] %s264_s17 }
  0x13   : > { %p1000_p6 = scmp.ge.s32.totalorder %s1428_s10, 2  ;;  %s1748_s4 = sld [smem:[#allocation27_spill]] }
  0x14   : > { %p1072_p4 = pneg %p1529_p3  ;;  %s1431_s22 = smov 64  }
  0x15   : > { %s1432_s23 = smov 4   ;;  %s1433_s24 = smov [#allocation12]  }
  0x16   : > { %p1537_p5 = pnand %p1072_p4, %p61_p1  ;;  %s281_s25 = sshll.u32 %s1433_s24, 4  ;;  %s282_s25 = int_to_ptr.vmem [resolvable:$true] %s281_s25 }
  0x17   : > { %s262_s14 = sshll.u32 %s1745_s2, 4  ;;  %s1749_s6 = sld [smem:[#allocation28_spill]]  ;;  %s263_s14 = int_to_ptr.hbm [resolvable:$true] %s262_s14 }
  0x18   : > { %1075 = dma.hbm_to_vmem [thread:$0]  (!%p1537_p5), %s263_s14, 256, %s265_s17, [#allocation10], %s1431_s22, %s1431_s22, %s1432_s23  }
  0x19   : > { %s279_s21 = sshll.u32 %s1748_s4, 4  ;;  %s1434_s16 = smov [#allocation14]   ;;  %s280_s21 = int_to_ptr.hbm [resolvable:$true] %s279_s21 }
  0x1a   : > { %1078 = dma.hbm_to_vmem [thread:$0]  (!%p1537_p5), %s280_s21, 256, %s282_s25, [#allocation13], %s1431_s22, %s1431_s22, %s1432_s23  }
  0x1b   : > { %s298_s19 = sshll.u32 %s1434_s16, 4  ;;  %s995_s14 = sadd.s32 4294967294, %s1428_s10   ;;  %s299_s19 = int_to_ptr.vmem [resolvable:$true] %s298_s19 }
  0x1c   : > { %s40_s17 = sadd.s32 1, %s1424_s9  ;;  %s47_s20 = sadd.s32 1, %s1416_s29 }
  0x1d   : > { %s296_s13 = sshll.u32 %s1749_s6, 4  ;;  %p42_p7 = scmp.ge.s32.totalorder %s40_s17, 2  ;;  %s297_s13 = int_to_ptr.hbm [resolvable:$true] %s296_s13 }
  0x1e   : > { %1081 = dma.hbm_to_vmem [thread:$0]  (!%p1537_p5), %s297_s13, 256, %s299_s19, [#allocation13], %s1431_s22, %s1431_s22, %s1432_s23  }
  0x1f   : > { %p54_p8 = scmp.ne.s32.totalorder %s1416_s29, %s1412_s28  ;;  %p55_p9 = scmp.eq.s32.totalorder %s1428_s10, 0 }
  0x20   : > { %p60_p10 = scmp.ne.s32.totalorder %s1412_s28, %s1408_s27  ;;  %s1768_s17 = smov (%p42_p7, %s40_s17), 0 }
  0x21   : > { %1750 = sst [smem:[#allocation23_spill]] %s1768_s17  ;;  %p1564_p11 = por %p55_p9, %p54_p8 }
  0x22   : > { %p1570_p12 = por %p61_p1, %p60_p10  ;;  %s44_s22 = ssub.s32 %s1424_s9, %s1768_s17 }
  0x23   : > { %p238_p13 = scmp.eq.s32.totalorder %s1521_s11, 1  ;;  %p45_p0 = scmp.eq.s32.totalorder %s44_s22, 0 }
  0x24   : > { %p244_p2 = scmp.eq.s32.totalorder %s995_s14, 1  ;;  %p1096_p5 = scmp.lt.s32.totalorder %s1428_s10, 2 }
  0x25   : > { %p1577_p4 = por %p238_p13, %p54_p8  ;;  %s315_s26 = sand.u32 1, %s1416_s29  }
  0x26   : > { %s1583_s24 = scalar_select %p45_p0, %s1416_s29, %s47_s20  }
  0x27   : > { %p1585_p7 = por %p244_p2, %p60_p10  ;;  %s1001_s12 = sshll.u32 %s315_s26, 2 }
  0x28   : > { %1754 = sst [smem:[#allocation24_spill]] %s1583_s24  ;;  %s1002_s13 = sshll.u32 %s1424_s9, 2 }
  0x29   : > { %s1755_s25 = scalar_select %p1585_p7, 1, 0 }
  0x2a   : > { %s323_s22 = scalar_lea.hbm %s1726_s0, %s1002_s13  ;;  %s319_s14 = scalar_lea.vmem [#allocation6], %s1001_s12 }
  0x2b   : > { %1756 = sst [smem:[#allocation25_spill]] %s1755_s25  ;;  %s327_s2 = sshll.u32 %s319_s14, 4  ;;  %s328_s2 = int_to_ptr.vmem [resolvable:$true] %s327_s2 }
  0x2c   : > { %s325_s4 = sshll.u32 %s323_s22, 4  ;;  %p1083_p8 = pnand %p1096_p5, %p1564_p11  ;;  %s326_s4 = int_to_ptr.hbm [resolvable:$true] %s325_s4 }
  0x2d   : > { %s334_s20 = sand.u32 1, %s1428_s10   ;;  %s316_s6 = scalar_lea.sflag [#allocation7], %s315_s26 }
  0x2e   : > { %1085 = dma.hbm_to_vmem [thread:$0]  (!%p1083_p8), %s326_s4, 64, %s328_s2, %s316_s6  }
  0x2f   : > { %s340_s29 = scalar_lea.hbm %s1727_s1, %s1424_s9  ;;  %s337_s25 = scalar_lea.vmem [#allocation9], %s315_s26 }
  0x30   : > { %s344_s27 = sshll.u32 %s337_s25, 4  ;;  %s342_s7 = sshll.u32 %s340_s29, 4  ;;  %s345_s27 = int_to_ptr.vmem [resolvable:$true] %s344_s27  ;;  %s343_s7 = int_to_ptr.hbm [resolvable:$true] %s342_s7 }
  0x31   : > { %s335_s13 = scalar_lea.sflag [#allocation10], %s334_s20  ;;  %353 = sbr.rel (%p1529_p3) target bundleno = 1189 (0x4a5), region = 52 }
  0x32   : > { %1088 = dma.hbm_to_vmem [thread:$0]  (!%p1083_p8), %s343_s7, 16, %s345_s27, %s335_s13  }
  0x33   : > { %s1604_s21 = sand.u32 (!%p1529_p3), 1, %s1412_s28  }
  0x34   : > { %s1004_s2 = sshll.u32 (!%p1529_p3), %s1604_s21, 2  ;;  %s356_s4 = scalar_lea.sflag (!%p1529_p3), [#allocation7], %s1604_s21 }
  0x35   : > { %s359_s6 = scalar_lea.vmem (!%p1529_p3), [#allocation6], %s1004_s2 }
  0x36   : > { %1387 = dma.done.wait (%p1570_p12), %s356_s4, 64  }
  0x37   : > { %1389 = vsyncadd (%p1570_p12), %s356_s4, 4294967232  ;;  %s365_s7 = sand.u32 1, %s1521_s11   ;;  %s368_s29 = scalar_lea.vmem [#allocation9], %s1604_s21 }
  0x38   : > { %s366_s27 = scalar_lea.sflag [#allocation10], %s365_s7 }
  0x39   : > { %1391 = dma.done.wait (%p1570_p12), %s366_s27, 16  }
  0x3a   : > { %1393 = vsyncadd (%p1570_p12), %s366_s27, 4294967280 }
  0x3b   : > { %1395 = dma.done.wait (%p61_p1), [#allocation10], 256  }
  0x3c   : > { %1397 = vsyncadd (%p61_p1), [#allocation10], 4294967040 }
  0x3d   : > { %1399 = dma.done.wait (%p61_p1), [#allocation13], 512  }
  0x3e   : > { %1401 = vsyncadd (%p61_p1), [#allocation13], 4294966784  ;;  %v1049_v0 = vld [vmem:[#allocation12 + $0x8] sm:$0xff]  ;;  %v1051_v1 = vld [vmem:[#allocation11 + $0x8] sm:$0xff]  ;;  %vm447_vm0 = vcmask 261120   ;;  %vm546_vm1 = vcmask 257024  }
  0x3f   : > { %v1048_v2 = vld [vmem:[#allocation12] sm:$0xff]  ;;  %457 = vmatpush.bf16.msra.mxu0 %v1049_v0  ;;  %538 = vmatpush.bf16.msra.mxu1 %v1051_v1  ;;  %v1050_v3 = vld [vmem:[#allocation11] sm:$0xff]  ;;  %v1164_v6 = vld [vmem:[%s1731_s5] ss:$0 sm:$0xff]  ;;  %vm465_vm2 = vcmask 60416   ;;  %s1435_s24 = smov 104  }
  0x40   : > { %v426_v4 = vld [vmem:[%s359_s6] sm:$0xf]  ;;  %v1165_v7 = vld [vmem:[%s1729_s3] ss:$0 sm:$0xff]  ;;  %s1436_s25 = smov 120   ;;  %vm555_vm3 = vcmask 64512  }
  0x41   : > { %v507_v5 = vld [vmem:[%s359_s6] sm:$0xf]  ;;  %s1437_s26 = smov 112   ;;  %s1438_s12 = smov 88   ;;  %vm588_vm4 = vcmask 1043456   ;;  %vm675_vm5 = vcmask 126016  }
  0x42   : > { %s1439_s16 = smov 80   ;;  %v1166_v42 = vld [vmem:[%s368_s29] ss:$0 sm:$0xff]  ;;  %s1440_s19 = smov 96   ;;  %vm742_vm6 = vcmask 191616   ;;  %vm809_vm7 = vcmask 257216  }
  0x43   : > { %458 = vmatpush.bf16.msra.mxu0 %v1048_v2  ;;  %539 = vmatpush.bf16.msra.mxu1 %v1050_v3  ;;  %s1441_s22 = smov 72   ;;  %s1442_s14 = smov 8  }
  0x44   : > { %s1443_s20 = smov 16   ;;  %s1444_s13 = smov 24  }
  0x45   : > { %s1045_s2 = sshll.u32 %s1420_s30, 3  ;;  %s1008_s4 = sshll.u32 %s1604_s21, 3 }
  0x46   : > { %1017 = vmatmul.msk.bf16.vlgmr.msra.gmra.mxu0 %vm447_vm0, %v426_v4  ;;  %1026 = vmatmul.msk.bf16.vlgmr.msra.gmra.mxu1 %vm447_vm0, %v507_v5  ;;  %s861_s27 = scalar_lea.hbm %s1734_s8, %s1045_s2  ;;  %s1757_s17 = sld [smem:[#allocation29_spill]] }
  0x47   : > { %s420_s11 = scalar_lea.vmem [#allocation15], %s1008_s4  ;;  %s850_s30 = scalar_lea.sflag [#allocation8], %s1604_s21 }
  0x48   : > { %s863_s18 = sshll.u32 %s420_s11, 4  ;;  %s864_s18 = int_to_ptr.vmem [resolvable:$true] %s863_s18 }
  0xc3   : > { %v460_v8 = vpop.f32.mrf.mxu0  ;;  %v541_v9 = vpop.f32.mrf.mxu1 }
  0xc4   : > { %v461_v10 = vadd.f32 %v1164_v6, %v460_v8  ;;  %v542_v11 = vadd.f32 %v1165_v7, %v541_v9 }
  0xc6   : > { %v1634_v12 = vpack.c.bf16 %v461_v10, %v461_v10  ;;  %v545_v13 = vpack.c.bf16 %v542_v11, %v542_v11 }
  0xc8   : > { %547 = vst.msk [vmem:[#allocation4] sm:$0xf] %vm546_vm1, %v545_v13  ;;  %492 = vrot.lane.b32.xlu2 %v1634_v12, %s1435_s24  ;;  %472 = vrot.lane.b32.xlu1 %v1634_v12, %s1436_s25 }
  0xc9   : > { %466 = vst.msk [vmem:[#allocation2] sm:$0xf] %vm465_vm2, %v1634_v12 }
  0xcb   : > { %v462_v14 = vpop.f32.mrf.mxu0  ;;  %v543_v15 = vpop.f32.mrf.mxu1 }
  0xcf   : > { %v610_v16 = vld [vmem:[#allocation4] sm:$0xf] }
  0xd0   : > { %482 = vrot.lane.b32.xlu1 %v1634_v12, %s1437_s26  ;;  %v550_v17 = vld [vmem:[#allocation2] sm:$0xf]  ;;  %v616_v18 = vunpack.c.l.b16 %v610_v16 }
  0xd1   : > { %v677_v19 = vld [vmem:[#allocation4] sm:$0xf]  ;;  %v560_v20 = vsel %vm555_vm3, %v550_v17, 0 }
  0xd2   : > { %v744_v21 = vld [vmem:[#allocation4] sm:$0xf]  ;;  %v683_v22 = vunpack.c.l.b16 %v677_v19  ;;  %569 = vmatpush.bf16.xpose.msra.mxu2 %v560_v20  ;;  %v617_v23 = vpack.c.b16 %v616_v18, %v616_v18 }
  0xd3   : > { %v750_v24 = vunpack.c.l.b16 %v744_v21  ;;  %v549_v26 = vld [vmem:[#allocation4] sm:$0xf] }
  0xd4   : > { %618 = vrot.lane.b32.xlu2 %v617_v23, %s1436_s25  ;;  %v684_v25 = vpack.c.b16 %v683_v22, %v683_v22 }
  0xd5   : > { %v751_v27 = vpack.c.b16 %v750_v24, %v750_v24 }
  0xd8   : > { %685 = vrot.lane.b32.xlu1 %v684_v25, %s1437_s26 }
  0xd9   : > { %1027 = vmatmul.msk.bf16.vlgmr.msra.gmra.mxu2 %vm555_vm3, %v549_v26 }
  0xdc   : > { %752 = vrot.lane.b32.xlu2 %v751_v27, %s1435_s24  ;;  %s865_s24 = sshll.u32 %s861_s27, 4  ;;  %s866_s24 = int_to_ptr.hbm [resolvable:$true] %s865_s24 }
  0xdd   : > { %s1348_s25 = sshra.s32 %s866_s24, 4  ;;  %s1349_s25 = int_to_ptr.hbm [resolvable:$true] %s1348_s25 }
  0xde   : > { %s1350_s26 = scalar_lea.hbm %s1349_s25, 8  ;;  %p1355_p10 = scmp.lt.s32.totalorder %s1349_s25, %s1734_s8 }
  0xdf   : > { %p1351_p1 = scmp.ne.s32.totalorder %s1349_s25, %s1350_s26 }
  0xe1   : > { %p1352_p3 = pnand %p1351_p1, %p1577_p4 }
  0xe3   : > { %p1353_p9 = pneg %p1352_p3 }
  0xe4   : > { %477 = vrot.lane.b32.xlu2 %v1634_v12, %s1438_s12 }
  0xec   : > { %487 = vrot.lane.b32.xlu2 %v1634_v12, %s1439_s16 }
 0x122   : > { %v493_v28 = vpop.permute.xlu2 %492 }
 0x123   : > { %496 = vst.msk [vmem:[#allocation2 + $0xc] sm:$0xf] %vm465_vm2, %v493_v28 }
 0x12a   : > { %v746_v60 = vld [vmem:[#allocation2 + $0xc] sm:$0xf] }
 0x12b   : > { %v758_v62 = vsel %vm555_vm3, %v746_v60, 0 }
 0x12e   : > { %v619_v29 = vpop.permute.xlu2 %618 }
 0x136   : > { %v753_v30 = vpop.permute.xlu2 %752 }
 0x13a   : > { %v473_v31 = vpop.permute.xlu1 %472 }
 0x13b   : > { %476 = vst.msk [vmem:[#allocation2 + $0x4] sm:$0xf] %vm465_vm2, %v473_v31 }
 0x13e   : > { %v478_v32 = vpop.permute.xlu2 %477 }
 0x13f   : > { %481 = vst.msk [vmem:[#allocation3 + $0x4] sm:$0xf] %vm465_vm2, %v478_v32 }
 0x142   : > { %v483_v33 = vpop.permute.xlu1 %482  ;;  %v612_v55 = vld [vmem:[#allocation2 + $0x4] sm:$0xf] }
 0x143   : > { %486 = vst.msk [vmem:[#allocation2 + $0x8] sm:$0xf] %vm465_vm2, %v483_v33  ;;  %v624_v59 = vsel %vm555_vm3, %v612_v55, 0  ;;  %v1052_v55 = vld [vmem:[#allocation14] sm:$0xff] }
 0x146   : > { %v488_v34 = vpop.permute.xlu2 %487  ;;  %v614_v35 = vld [vmem:[#allocation3 + $0x4] sm:$0xf] }
 0x147   : > { %491 = vst.msk [vmem:[#allocation3 + $0x8] sm:$0xf] %vm465_vm2, %v488_v34  ;;  %v653_v36 = vsel %vm588_vm4, %v614_v35, 0 }
 0x148   : > { %662 = vmatpush.bf16.msrb.mxu0 %v653_v36 }
 0x14a   : > { %v679_v37 = vld [vmem:[#allocation2 + $0x8] sm:$0xf]  ;;  %v686_v41 = vpop.permute.xlu1 %685 }
 0x14b   : > { %v691_v38 = vsel %vm555_vm3, %v679_v37, 0 }
 0x14c   : > { %700 = vmatpush.bf16.xpose.msrb.mxu1 %v691_v38 }
 0x14e   : > { %v681_v39 = vld [vmem:[#allocation3 + $0x8] sm:$0xf] }
 0x14f   : > { %v720_v40 = vsel %vm588_vm4, %v681_v39, 0 }
 0x150   : > { %729 = vmatpush.bf16.msrb.mxu2 %v720_v40 }
 0x153   : > { %1031 = vmatmul.msk.bf16.vlgmr.msrb.gmra.mxu1 %vm555_vm3, %v686_v41 }
 0x15c   : > { %v571_v43 = vpop.f32.mrf.mxu2 }
 0x15d   : > { %v572_v44 = vadd.f32 %v1166_v42, %v571_v43 }
 0x15f   : > { %v575_v45 = vsel %vm555_vm3, %v572_v44, -inf }
 0x160   : > { %576 = vmax.xlane.f32.xlu0 %v575_v45 }
 0x164   : > { %v573_v46 = vpop.f32.mrf.mxu2 }
 0x174   : > { %468 = vrot.lane.b32.xlu0 %v1634_v12, %s1440_s19  ;;  %s1354_s19 = scalar_lea.hbm %s1734_s8, 16 }
 0x175   : > { %p1356_p11 = scmp.lt.s32.totalorder %s1354_s19, %s1350_s26 }
 0x177   : > { %p1357_p12 = por %p1356_p11, %p1355_p10 }
 0x179   : > { %p1358_p13 = pnand %p1357_p12, %p1353_p9 }
 0x1d0   : > { %v702_v47 = vpop.f32.mrf.mxu1 }
 0x1d1   : > { %v703_v48 = vadd.f32 %v1166_v42, %v702_v47 }
 0x1d3   : > { %v706_v49 = vsel %vm555_vm3, %v703_v48, -inf  ;;  %v577_v51 = vpop.xlane.xlu0 %576 }
 0x1d4   : > { %707 = vmax.xlane.f32.xlu0 %v706_v49  ;;  %v578_v52 = vsub.f32 %v572_v44, %v577_v51 }
 0x1d6   : > { %v579_v53 = vmul.f32 1.442695, %v578_v52 }
 0x1d8   : > { %v704_v50 = vpop.f32.mrf.mxu1  ;;  %1168 = vpow2.f32 %v579_v53 }
 0x1de   : > { %v1169_v56 = vpop.eup %1168 }
 0x1df   : > { %v584_v61 = vpack.c.bf16 %v1169_v56, %v1169_v56 }
 0x1e6   : > { %v469_v54 = vpop.permute.xlu0 %468 }
 0x1e7   : > { %471 = vst.msk [vmem:[#allocation3] sm:$0xf] %vm465_vm2, %v469_v54  ;;  %v1053_v54 = vld [vmem:[#allocation14 + $0x8] sm:$0xff] }
 0x1e8   : > { %841 = vmatpush.bf16.msra.mxu1 %v1053_v54 }
 0x1ec   : > { %842 = vmatpush.bf16.msra.mxu1 %v1052_v55 }
 0x1ee   : > { %v551_v57 = vld [vmem:[#allocation3] sm:$0xf] }
 0x1ef   : > { %v590_v58 = vsel %vm588_vm4, %v551_v57, 0 }
 0x1f0   : > { %599 = vmatpush.bf16.msra.mxu3 %v590_v58 }
 0x1f3   : > { %1028 = vmatmul.msk.bf16.vlgmr.msra.gmra.mxu3 %vm555_vm3, %v584_v61 }
 0x1f4   : > { %633 = vmatpush.bf16.xpose.msrb.mxu3 %v624_v59  ;;  %v1167_v59 = vld [vmem:[%s1757_s17] ss:$0 sm:$0xff] }
 0x1fc   : > { %767 = vmatpush.bf16.xpose.msra.mxu3 %v758_v62 }
 0x203   : > { %1029 = vmatmul.msk.bf16.vlgmr.msrb.gmra.mxu3 %vm555_vm3, %v619_v29  ;;  %v581_v29 = vsel %vm555_vm3, %v1169_v56, 0.0 }
 0x213   : > { %1033 = vmatmul.msk.bf16.vlgmr.msra.gmra.mxu3 %vm555_vm3, %v753_v30 }
 0x247   : > { %v708_v63 = vpop.xlane.xlu0 %707 }
 0x248   : > { %v709_v0 = vsub.f32 %v703_v48, %v708_v63 }
 0x24a   : > { %v710_v1 = vmul.f32 1.442695, %v709_v0 }
 0x24c   : > { %1170 = vpow2.f32 %v710_v1 }
 0x252   : > { %v1171_v2 = vpop.eup %1170 }
 0x253   : > { %v715_v3 = vpack.c.bf16 %v1171_v2, %v1171_v2  ;;  %v712_v26 = vsel %vm555_vm3, %v1171_v2, 0.0 }
 0x255   : > { %1032 = vmatmul.msk.bf16.vlgmr.msrb.gmra.mxu2 %vm555_vm3, %v715_v3 }
 0x276   : > { %v1667_v4 = vpop.f32.mrf.mxu3 }
 0x27e   : > { %v603_v5 = vpop.f32.mrf.mxu3 }
 0x286   : > { %v635_v6 = vpop.f32.mrf.mxu3 }
 0x287   : > { %v636_v7 = vadd.f32 %v1166_v42, %v635_v6 }
 0x289   : > { %v639_v8 = vsel %vm555_vm3, %v636_v7, -inf }
 0x28a   : > { %640 = vmax.xlane.f32.xlu1 %v639_v8 }
 0x28e   : > { %v637_v9 = vpop.f32.mrf.mxu3 }
 0x296   : > { %v769_v10 = vpop.f32.mrf.mxu3 }
 0x297   : > { %v770_v11 = vadd.f32 %v1166_v42, %v769_v10 }
 0x299   : > { %v773_v13 = vsel %vm555_vm3, %v770_v11, -inf }
 0x29a   : > { %774 = vmax.xlane.f32.xlu2 %v773_v13 }
 0x29e   : > { %v771_v14 = vpop.f32.mrf.mxu3 }
 0x2a3   : > { %497 = vrot.lane.b32.xlu1 %v1634_v12, %s1441_s22 }
 0x2d8   : > { %v731_v15 = vpop.f32.mrf.mxu2 }
 0x2e0   : > { %v733_v16 = vpop.f32.mrf.mxu2 }
 0x2fd   : > { %v641_v17 = vpop.xlane.xlu1 %640 }
 0x2fe   : > { %v642_v18 = vsub.f32 %v636_v7, %v641_v17 }
 0x300   : > { %v643_v19 = vmul.f32 1.442695, %v642_v18 }
 0x302   : > { %1172 = vpow2.f32 %v643_v19 }
 0x308   : > { %v1173_v20 = vpop.eup %1172 }
 0x309   : > { %v645_v21 = vsel %vm555_vm3, %v1173_v20, 0.0  ;;  %v648_v22 = vpack.c.bf16 %v1173_v20, %v1173_v20 }
 0x30a   : > { %646 = vadd.xlane.f32.xlu0 %v645_v21 }
 0x30b   : > { %1030 = vmatmul.msk.bf16.vlgmr.msrb.gmra.mxu0 %vm555_vm3, %v648_v22 }
 0x30d   : > { %v775_v23 = vpop.xlane.xlu2 %774 }
 0x30e   : > { %v776_v24 = vsub.f32 %v770_v11, %v775_v23 }
 0x310   : > { %v777_v25 = vmul.f32 1.442695, %v776_v24 }
 0x312   : > { %1174 = vpow2.f32 %v777_v25  ;;  %713 = vadd.xlane.f32.xlu0 %v712_v26 }
 0x315   : > { %v498_v12 = vpop.permute.xlu1 %497 }
 0x316   : > { %501 = vst.msk [vmem:[#allocation3 + $0xc] sm:$0xf] %vm465_vm2, %v498_v12 }
 0x318   : > { %v1175_v27 = vpop.eup %1174 }
 0x319   : > { %v779_v28 = vsel %vm555_vm3, %v1175_v27, 0.0  ;;  %v782_v32 = vpack.c.bf16 %v1175_v27, %v1175_v27 }
 0x31a   : > { %780 = vadd.xlane.f32.xlu2 %v779_v28  ;;  %582 = vadd.xlane.f32.xlu0 %v581_v29 }
 0x31d   : > { %v748_v30 = vld [vmem:[#allocation3 + $0xc] sm:$0xf] }
 0x31e   : > { %v787_v31 = vsel %vm588_vm4, %v748_v30, 0 }
 0x31f   : > { %796 = vmatpush.bf16.msra.mxu0 %v787_v31 }
 0x322   : > { %1034 = vmatmul.msk.bf16.vlgmr.msra.gmra.mxu0 %vm555_vm3, %v782_v32 }
 0x37d   : > { %v647_v33 = vpop.xlane.xlu0 %646 }
 0x37e   : > { %1176 = vrcp.f32 %v647_v33 }
 0x384   : > { %v1177_v35 = vpop.eup %1176 }
 0x385   : > { %v714_v34 = vpop.xlane.xlu0 %713 }
 0x386   : > { %1178 = vrcp.f32 %v714_v34 }
 0x388   : > { %v664_v36 = vpop.f32.mrf.mxu0 }
 0x389   : > { %v669_v37 = vmul.f32 %v1177_v35, %v664_v36 }
 0x38b   : > { %v670_v38 = vpack.c.bf16 %v669_v37, %v669_v37 }
 0x38c   : > { %v1179_v39 = vpop.eup %1178 }
 0x38d   : > { %672 = vrot.lane.b32.xlu2 %v670_v38, %s1442_s14  ;;  %v583_v40 = vpop.xlane.xlu0 %582  ;;  %v736_v41 = vmul.f32 %v1179_v39, %v731_v15  ;;  %v781_v45 = vpop.xlane.xlu2 %780 }
 0x38e   : > { %1180 = vrcp.f32 %v583_v40 }
 0x38f   : > { %v737_v42 = vpack.c.bf16 %v736_v41, %v736_v41  ;;  %1182 = vrcp.f32 %v781_v45 }
 0x390   : > { %v666_v43 = vpop.f32.mrf.mxu0 }
 0x391   : > { %739 = vrot.lane.b32.xlu1 %v737_v42, %s1443_s20 }
 0x394   : > { %v1181_v44 = vpop.eup %1180 }
 0x395   : > { %v606_v46 = vmul.f32 %v1181_v44, %v1667_v4  ;;  %v1183_v48 = vpop.eup %1182 }
 0x397   : > { %v607_v47 = vpack.c.bf16 %v606_v46, %v606_v46 }
 0x399   : > { %609 = vst.msk [vmem:[#allocation5] sm:$0xf] %vm465_vm2, %v607_v47 }
 0x39f   : > { %v798_v49 = vpop.f32.mrf.mxu0 }
 0x3a0   : > { %v803_v50 = vmul.f32 %v1183_v48, %v798_v49 }
 0x3a2   : > { %v804_v51 = vpack.c.bf16 %v803_v50, %v803_v50 }
 0x3a4   : > { %806 = vrot.lane.b32.xlu0 %v804_v51, %s1444_s13 }
 0x3a7   : > { %v800_v52 = vpop.f32.mrf.mxu0 }
 0x3e7   : > { %v673_v53 = vpop.permute.xlu2 %672 }
 0x3e8   : > { %676 = vst.msk [vmem:[#allocation5] sm:$0xf] %vm675_vm5, %v673_v53 }
 0x403   : > { %v740_v56 = vpop.permute.xlu1 %739 }
 0x404   : > { %743 = vst.msk [vmem:[#allocation5] sm:$0xf] %vm742_vm6, %v740_v56 }
 0x416   : > { %v807_v57 = vpop.permute.xlu0 %806 }
 0x417   : > { %810 = vst.msk [vmem:[#allocation5] sm:$0xf] %vm809_vm7, %v807_v57 }
 0x41e   : > { %v811_v58 = vld [vmem:[#allocation5] sm:$0xf] }
 0x41f   : > { %1043 = vmatmul.msk.bf16.vlgmr.msra.gmra.mxu1 %vm447_vm0, %v811_v58 }
 0x49c   : > { %v844_v60 = vpop.f32.mrf.mxu1 }
 0x49d   : > { %v845_v61 = vadd.f32 %v1167_v59, %v844_v60 }
 0x49f   : > { %848 = vst.msk [vmem:[%s420_s11] sm:$0xff] %vm447_vm0, %v845_v61 }
 0x4a0   : > { %1361 = shalt.err (!%p1358_p13)
}
 0x4a1   : > { %1070 = dma.vmem_to_hbm [thread:$0]  (%p1577_p4), %s864_s18, 128, %s866_s24, %s850_s30  }
 0x4a4   : > { %v846_v62 = vpop.f32.mrf.mxu1 }
 0x4a5 PF: > { %s1758_s21 = sld [smem:[#allocation21_spill]]  ;;  %p1090_p0 = pnand %p1000_p6, %p1585_p7 }
 0x4a7   : > { %p1091_p2 = pneg %p1090_p0 }
 0x4ab   : > { %s877_s13 = sand.u32 1, %s1758_s21  }
 0x4ac   : > { %s878_s2 = scalar_lea.sflag [#allocation8], %s877_s13 }
 0x4ad   : > { %1403 = dma.done.wait (%p1091_p2), %s878_s2, 128  }
 0x4ae   : > { %1405 = vsyncadd (%p1091_p2), %s878_s2, 4294967168  ;;  %s28_s10 = sadd.s32 1, %s1428_s10   ;;  %s1760_s4 = sld [smem:[#allocation22_spill]] }
 0x4af   : > { %p25_p5 = scmp.ge.s32.totalorder %s28_s10, 4   ;;  %s1761_s29 = sld [smem:[#allocation24_spill]] }
 0x4b0   : > { %s1762_s23 = sld [smem:[#allocation23_spill]]  ;;  %s1763_s27 = smov %s1412_s28 }
 0x4b1   : > { %s1765_s30 = smov %s1424_s9 }
 0x4b2   :  { %27 = sbr.rel (!%p25_p5) target bundleno = 14 (0xe), region = 139 }
 0x4b4   : > { %s1764_s28 = smov %s1760_s4 }
 0x4b6   : > { %s1766_s9 = smov %s1762_s23 }
 0x4b7   :  { %884 = vsyncpa [#allocation7], 1 }
 0x4b8   :  { %886 = vsyncpa [#allocation7 + $0x1], 1 }
 0x4b9   :  { %887 = vsyncpa [#allocation10], 1 }
 0x4ba   :  { %889 = vsyncpa [#allocation10 + $0x1], 1 }
 0x4bb   :  { %890 = vsyncpa [#allocation13], 1 }
 0x4bc   :  { %891 = vsyncpa [#allocation8], 1 }
 0x4bd   :  { %893 = vsyncpa [#allocation8 + $0x1], 1 }

</bundles_post_ra>
